<compile_context>
chip_gen: v7x
topology: tpu7x:2x2x1
jax: 0.10.0
libtpu: 0.0.40
codegen_flags: <defaults>
</compile_context>

<pallas_src>
import functools
import math

import jax
import jax.numpy as jnp
from jax import lax
from jax.experimental import pallas as pl
from jax.experimental.pallas import tpu as pltpu

EPS = 1e-8
NEG_LOG_EPS = -math.log(EPS)          # 18.420680... == -log(clamp floor)
LANES = 128
STRIP_ROWS = 64                       # (64,128) f32 = 8 vregs per operand per strip
TARGET_BLOCK_ROWS = 2048              # 1 MiB f32 per input block
X_PAD = -1.0e4                        # with y_pad = 0: exactly zero loss contribution


def _round_up(a, b):
    return -(-a // b) * b


def _row_align(dtype):
    # Sublane packing granularity: f32 -> 8, bf16/f16 -> 16, int8/fp8 -> 32.
    return max(8, 32 // jnp.dtype(dtype).itemsize)


def _bce_terms(x, y, m):
    """Negated per-element BCE-with-logits loss with clamp-at-eps semantics."""
    sp = jnp.log(1.0 + jnp.exp(-jnp.abs(x)))                   # 1 exp + 1 log
    tp = jnp.minimum(jnp.maximum(-x, 0.0) + sp, NEG_LOG_EPS)   # -log(clamp(sig(x)))
    tn = jnp.minimum(jnp.maximum(x, 0.0) + sp, NEG_LOG_EPS)    # -log(clamp(1-sig(x)))
    contrib = tn + y * (tp - tn)                               # == y*tp + (1-y)*tn
    if m is not None:
        contrib = contrib * m
    return contrib


def _fold8(v):
    """Fold an (r, 128) f32 tile (r % 8 == 0) into (8, 128) with VPU adds."""
    r, _ = v.shape
    if r == 8:
        return v
    return jnp.sum(v.reshape(r // 8, 8, LANES), axis=0)


def _bce_kernel(*refs, has_mask, block_rows, blocks_per_split, num_blocks,
                rows_total, ragged, need_gate):
    if has_mask:
        x_ref, y_ref, m_ref, out_ref = refs
    else:
        x_ref, y_ref, out_ref = refs
        m_ref = None

    c = pl.program_id(0)
    i = pl.program_id(1)

    @pl.when(i == 0)
    def _init():
        out_ref[...] = jnp.zeros_like(out_ref)

    def strip_contrib(row0, nrows):
        xs = x_ref[pl.ds(row0, nrows), :].astype(jnp.float32)
        ys = y_ref[pl.ds(row0, nrows), :].astype(jnp.float32)
        ms = (m_ref[pl.ds(row0, nrows), :].astype(jnp.float32)
              if has_mask else None)
        return _bce_terms(xs, ys, ms)

    def loop_body(s, acc):
        r0 = pl.multiple_of(s * STRIP_ROWS, STRIP_ROWS)
        return acc + _fold8(strip_contrib(r0, STRIP_ROWS))

    def do_block():
        if not ragged:
            # Every block is fully valid: purely static strip schedule.
            n_full, rem = divmod(block_rows, STRIP_ROWS)
            acc = jnp.zeros((8, LANES), jnp.float32)
            if 0 < n_full <= 4:
                for s in range(n_full):
                    acc = acc + _fold8(strip_contrib(s * STRIP_ROWS, STRIP_ROWS))
            elif n_full > 4:
                acc = lax.fori_loop(0, n_full, loop_body, acc)
            if rem:  # only for tiny full-extent blocks (rem is a multiple of 8)
                acc = acc + _fold8(strip_contrib(n_full * STRIP_ROWS, rem))
            out_ref[...] += acc[None]
        else:
            # block_rows % STRIP_ROWS == 0 by construction.  Only the last real
            # block has valid < block_rows, so the masked tail strip below is
            # skipped at runtime everywhere else (no hot-path masking).
            g = c * blocks_per_split + i
            valid = jnp.minimum(block_rows, rows_total - g * block_rows)
            n_full = valid // STRIP_ROWS
            rem = valid - n_full * STRIP_ROWS

            acc = lax.fori_loop(0, n_full, loop_body,
                                jnp.zeros((8, LANES), jnp.float32))
            out_ref[...] += acc[None]

            @pl.when(rem > 0)
            def _tail():
                r0 = pl.multiple_of(n_full * STRIP_ROWS, STRIP_ROWS)
                v = strip_contrib(r0, STRIP_ROWS)
                rowid = lax.broadcasted_iota(jnp.int32, (STRIP_ROWS, LANES), 0)
                v = jnp.where(rowid < rem, v, 0.0)
                out_ref[...] += _fold8(v)[None]

    if need_gate:
        # Odd block count: the one duplicate grid step (index_map clamped to the
        # last real block) is skipped here -> no double counting.
        g = c * blocks_per_split + i
        pl.when(g < num_blocks)(do_block)
    else:
        do_block()


def bce_with_logit_loss(x, y, mask=None, use_copy_decoupling=False,
                        target_block_rows=TARGET_BLOCK_ROWS):
    """Pallas TPU implementation of BCEWithLogitLoss.forward (scalar f32 result)."""
    assert x.shape == y.shape
    n_elems = int(x.size)
    assert n_elems > 0
    has_mask = (mask is not None) and use_copy_decoupling

    arrays = [(x, X_PAD), (y, 0)]
    if has_mask:
        assert mask.shape == x.shape
        m = mask.astype(x.dtype) if mask.dtype == jnp.bool_ else mask
        arrays.append((m, 0))

    align = max(_row_align(a.dtype) for a, _ in arrays)
    target = max(STRIP_ROWS, _round_up(int(target_block_rows), STRIP_ROWS))

    rows_needed = pl.cdiv(n_elems, LANES)

    if rows_needed <= 2 * STRIP_ROWS:
        # Tiny tensor: single full-extent block; the (<= 128x128-element)
        # wrapper pad is negligible.
        block_rows = _round_up(rows_needed, align)
        rows_slab = block_rows
        num_blocks = 1
    else:
        # Large tensor: 64-row-multiple blocks <= target, at least 2 blocks so
        # both v7x TensorCores get work, even block count where possible.
        rows_slab = rows_needed                       # no row padding / copy
        nb = max(2, pl.cdiv(rows_needed, target))
        if nb % 2:
            nb += 1
        block_rows = min(target, _round_up(pl.cdiv(rows_needed, nb), STRIP_ROWS))
        num_blocks = pl.cdiv(rows_needed, block_rows)

    ragged = (rows_slab % block_rows) != 0
    num_splits = 2 if num_blocks >= 2 else 1
    blocks_per_split = pl.cdiv(num_blocks, num_splits)
    need_gate = num_splits * blocks_per_split != num_blocks

    n_slab = rows_slab * LANES
    n_pad = n_slab - n_elems

    def to_slab(a, pad_value):
        flat = a.reshape(-1)                    # free for contiguous arrays
        if n_pad:
            # TODO(synk): for lane-misaligned sizes this is one whole-tensor
            # copy; unavoidable without element-granular manual DMA.  Pad
            # values are chosen so padded elements contribute exactly 0 loss.
            flat = jnp.pad(flat, (0, n_pad), constant_values=pad_value)
        return flat.reshape(rows_slab, LANES)

    slabs = [to_slab(a, pv) for a, pv in arrays]

    kernel = functools.partial(
        _bce_kernel,
        has_mask=has_mask,
        block_rows=block_rows,
        blocks_per_split=blocks_per_split,
        num_blocks=num_blocks,
        rows_total=rows_slab,
        ragged=ragged,
        need_gate=need_gate,
    )

    if need_gate:
        def in_map(c, i):
            return (jnp.minimum(c * blocks_per_split + i, num_blocks - 1), 0)
    else:
        def in_map(c, i):
            return (c * blocks_per_split + i, 0)

    in_spec = pl.BlockSpec((block_rows, LANES), in_map)

    cost = pl.CostEstimate(
        flops=10 * n_slab,
        transcendentals=2 * n_slab,
        bytes_accessed=int(sum(s.size * s.dtype.itemsize for s in slabs))
        + num_splits * 8 * LANES * 4,
    )

    partials = pl.pallas_call(
        kernel,
        out_shape=jax.ShapeDtypeStruct((num_splits, 8, LANES), jnp.float32),
        grid_spec=pltpu.PrefetchScalarGridSpec(
            num_scalar_prefetch=0,
            grid=(num_splits, blocks_per_split),
            in_specs=[in_spec] * len(slabs),
            out_specs=pl.BlockSpec((1, 8, LANES), lambda c, i: (c, 0, 0)),
        ),
        compiler_params=pltpu.CompilerParams(
            # TODO(synk): on v7x verify via trace that "parallel" shards the
            # leading axis across both TensorCores; else use pltpu.CORE_PARALLEL.
            dimension_semantics=("parallel", "arbitrary")),
        cost_estimate=cost,
    )(*slabs)

    # The kernel accumulates the NEGATED per-element loss, so the final result
    # (-loss.mean()) is just the mean; divisor is the true element count.
    return jnp.sum(partials) * (1.0 / float(n_elems))


def _reference(x, y, mask=None, use_copy_decoupling=False):
    xs_pos = jax.nn.sigmoid(x.astype(jnp.float32))
    xs_neg = 1.0 - xs_pos
    yf = y.astype(jnp.float32)
    loss = yf * jnp.log(jnp.maximum(xs_pos, EPS)) \
         + (1.0 - yf) * jnp.log(jnp.maximum(xs_neg, EPS))
    if mask is not None and use_copy_decoupling:
        loss = loss * mask.astype(jnp.float32)
    return -jnp.mean(loss)


def _check(x, y, mask, use_cd, rtol=1e-5, atol=1e-5, **kw):
    out = bce_with_logit_loss(x, y, mask=mask, use_copy_decoupling=use_cd, **kw)
    out = jax.block_until_ready(out)
    ref = _reference(x, y, mask=mask, use_copy_decoupling=use_cd)
    assert jnp.allclose(out, ref, rtol=rtol, atol=atol), (float(out), float(ref))


if __name__ == "__main__":
    key = jax.random.PRNGKey(0)
    kx, ky, km = jax.random.split(key, 3)

    # 1) NCHW logits / multi-label targets, size multiple of 128 -> no copies.
    shape = (2, 4, 16, 16)
    x = jax.random.normal(kx, shape, dtype=jnp.float32)
    y = (jax.random.uniform(ky, shape) > 0.5).astype(jnp.float32)
    mask = (jax.random.uniform(km, shape) > 0.3).astype(jnp.float32)
    _check(x, y, mask, use_cd=False)   # mask ignored
    _check(x, y, mask, use_cd=True)    # mask applied in-kernel

    # 2) Ragged size -> lane-tail padded with zero-contribution pad values.
    shape_r = (2, 3, 7, 5)
    xr = jax.random.normal(kx, shape_r, dtype=jnp.float32)
    yr = (jax.random.uniform(ky, shape_r) > 0.5).astype(jnp.float32)
    mr = (jax.random.uniform(km, shape_r) > 0.3).astype(jnp.float32)
    _check(xr, yr, mr, use_cd=False)
    _check(xr, yr, mr, use_cd=True)

    # 3) bf16 inputs streamed in native dtype (16-row alignment).
    xb = x.astype(jnp.bfloat16)
    yb = y.astype(jnp.bfloat16)
    _check(xb, yb, None, use_cd=False, rtol=1e-4, atol=1e-4)

    # 4) Larger tensor -> multi-block, ragged last block (dynamic strips +
    #    masked tail strip) and 2-way TensorCore split.
    shape_l = (2, 12, 100, 128)
    xl = jax.random.normal(kx, shape_l, dtype=jnp.float32)
    yl = (jax.random.uniform(ky, shape_l) > 0.5).astype(jnp.float32)
    _check(xl, yl, None, use_cd=False)

    # 5) Odd block count (small target to hit it at small size) -> exercises
    #    the clamped duplicate block + pl.when gate.
    shape_g = (2, 65, 128)
    xg = jax.random.normal(kx, shape_g, dtype=jnp.float32)
    yg = (jax.random.uniform(ky, shape_g) > 0.5).astype(jnp.float32)
    _check(xg, yg, None, use_cd=False, target_block_rows=64)

    print("KERNEL_OK")
</pallas_src>

<mosaic_0001>
module attributes {stable_mosaic.version = 11 : i64} {
  func.func @_bce_kernel(%arg0: i32, %arg1: i32, %arg2: memref<16x128xf32, #tpu.memory_space<vmem>>, %arg3: memref<16x128xf32, #tpu.memory_space<vmem>>, %arg4: memref<1x8x128xf32, #tpu.memory_space<vmem>>) attributes {dimension_semantics = [#tpu.dimension_semantics<parallel>, #tpu.dimension_semantics<arbitrary>], iteration_bounds = array<i64: 1, 1>, scalar_prefetch = 0 : i64, scratch_operands = 0 : i64, tpu.core_type = #tpu.core_type<tc>, window_params = [{transform_indices = @transform_0, window_bounds = array<i64: 16, 128>}, {transform_indices = @transform_1, window_bounds = array<i64: 16, 128>}, {transform_indices = @transform_2, window_bounds = array<i64: 1, 8, 128>}]} {
    %c0_i32 = arith.constant 0 : i32
    %0 = arith.cmpi eq, %arg1, %c0_i32 : i32
    %1 = arith.extui %0 : i1 to i32
    %c0_i32_0 = arith.constant 0 : i32
    %2 = arith.cmpi ne, %1, %c0_i32_0 : i32
    scf.if %2 {
      %cst_18 = arith.constant 0.000000e+00 : f32
      %35 = vector.broadcast %cst_18 : f32 to vector<1x8x128xf32>
      %c0_19 = arith.constant 0 : index
      %c0_20 = arith.constant 0 : index
      %c0_21 = arith.constant 0 : index
      %36 = vector.load %arg4[%c0_19, %c0_20, %c0_21] : memref<1x8x128xf32, #tpu.memory_space<vmem>>, vector<1x8x128xf32>
      tpu.vector_store %arg4[%c0_19, %c0_20, %c0_21], %35 {strides = array<i32>} : memref<1x8x128xf32, #tpu.memory_space<vmem>>, vector<1x8x128xf32>,
    } else {
    }
    %cst = arith.constant 0.000000e+00 : f32
    %3 = vector.broadcast %cst : f32 to vector<8x128xf32>
    %c0 = arith.constant 0 : index
    %c0_1 = arith.constant 0 : index
    %4 = vector.load %arg2[%c0, %c0_1] : memref<16x128xf32, #tpu.memory_space<vmem>>, vector<16x128xf32>
    %c0_2 = arith.constant 0 : index
    %c0_3 = arith.constant 0 : index
    %5 = vector.load %arg3[%c0_2, %c0_3] : memref<16x128xf32, #tpu.memory_space<vmem>>, vector<16x128xf32>
    %6 = math.absf %4 : vector<16x128xf32>
    %cst_4 = arith.constant 0.000000e+00 : f32
    %7 = vector.broadcast %cst_4 : f32 to vector<16x128xf32>
    %8 = arith.subf %7, %6 : vector<16x128xf32>
    %9 = math.exp %8 : vector<16x128xf32>
    %cst_5 = arith.constant 1.000000e+00 : f32
    %10 = vector.broadcast %cst_5 : f32 to vector<16x128xf32>
    %11 = arith.addf %10, %9 : vector<16x128xf32>
    %12 = math.log %11 : vector<16x128xf32>
    %cst_6 = arith.constant 0.000000e+00 : f32
    %13 = vector.broadcast %cst_6 : f32 to vector<16x128xf32>
    %14 = arith.subf %13, %4 : vector<16x128xf32>
    %cst_7 = arith.constant 0.000000e+00 : f32
    %15 = vector.broadcast %cst_7 : f32 to vector<16x128xf32>
    %16 = arith.maximumf %14, %15 : vector<16x128xf32>
    %17 = arith.addf %16, %12 : vector<16x128xf32>
    %cst_8 = arith.constant 18.420681 : f32
    %18 = vector.broadcast %cst_8 : f32 to vector<16x128xf32>
    %19 = arith.minimumf %17, %18 : vector<16x128xf32>
    %cst_9 = arith.constant 0.000000e+00 : f32
    %20 = vector.broadcast %cst_9 : f32 to vector<16x128xf32>
    %21 = arith.maximumf %4, %20 : vector<16x128xf32>
    %22 = arith.addf %21, %12 : vector<16x128xf32>
    %cst_10 = arith.constant 18.420681 : f32
    %23 = vector.broadcast %cst_10 : f32 to vector<16x128xf32>
    %24 = arith.minimumf %22, %23 : vector<16x128xf32>
    %25 = arith.subf %19, %24 : vector<16x128xf32>
    %26 = arith.mulf %5, %25 : vector<16x128xf32>
    %27 = arith.addf %24, %26 : vector<16x128xf32>
    %28 = vector.shape_cast %27 : vector<16x128xf32> to vector<2x8x128xf32>
    %cst_11 = arith.constant dense<0.000000e+00> : vector<8x128xf32>
    %29 = vector.multi_reduction <add>, %28, %cst_11 [0] : vector<2x8x128xf32> to vector<8x128xf32>
    %30 = arith.addf %3, %29 : vector<8x128xf32>
    %c0_12 = arith.constant 0 : index
    %c0_13 = arith.constant 0 : index
    %c0_14 = arith.constant 0 : index
    %31 = vector.load %arg4[%c0_12, %c0_13, %c0_14] : memref<1x8x128xf32, #tpu.memory_space<vmem>>, vector<1x8x128xf32>
    %32 = vector.shape_cast %30 : vector<8x128xf32> to vector<1x8x128xf32>
    %33 = arith.addf %31, %32 : vector<1x8x128xf32>
    %c0_15 = arith.constant 0 : index
    %c0_16 = arith.constant 0 : index
    %c0_17 = arith.constant 0 : index
    %34 = vector.load %arg4[%c0_15, %c0_16, %c0_17] : memref<1x8x128xf32, #tpu.memory_space<vmem>>, vector<1x8x128xf32>
    tpu.vector_store %arg4[%c0_15, %c0_16, %c0_17], %33 {strides = array<i32>} : memref<1x8x128xf32, #tpu.memory_space<vmem>>, vector<1x8x128xf32>,
    return
  }
  func.func @transform_0(%arg0: i32, %arg1: i32) -> (i32, i32) {
    %c1_i32 = arith.constant 1 : i32
    %0 = arith.muli %arg0, %c1_i32 : i32
    %1 = arith.addi %0, %arg1 : i32
    %c0_i32 = arith.constant 0 : i32
    %c0_i32_0 = arith.constant 0 : i32
    return %1, %c0_i32 : i32, i32
  }
  func.func @transform_1(%arg0: i32, %arg1: i32) -> (i32, i32) {
    %c1_i32 = arith.constant 1 : i32
    %0 = arith.muli %arg0, %c1_i32 : i32
    %1 = arith.addi %0, %arg1 : i32
    %c0_i32 = arith.constant 0 : i32
    %c0_i32_0 = arith.constant 0 : i32
    return %1, %c0_i32 : i32, i32
  }
  func.func @transform_2(%arg0: i32, %arg1: i32) -> (i32, i32, i32) {
    %c0_i32 = arith.constant 0 : i32
    %c0_i32_0 = arith.constant 0 : i32
    %c0_i32_1 = arith.constant 0 : i32
    return %arg0, %c0_i32, %c0_i32_0 : i32, i32, i32
  }
}

</mosaic_0001>

<bundles_post_ra>
// kernel: tpu_custom_call.1
= control target key start
LH: loop header
LB: loop body
LE: loop exit
PB: predicated region body
PF: predicated region fallthrough
CT: control target
= control target key end

     0   :  { %7 = vsyncpa [#allocation3], 0  ;;  %s258_s0 = inlined_call_operand.hbm [shape: f32[16,128], index: 0, kind: input, shape index: {}]   ;;  %s259_s1 = inlined_call_operand.hbm [shape: f32[16,128], index: 1, kind: input, shape index: {}]   ;;  %s260_s2 = inlined_call_operand.hbm [shape: f32[1,8,128], index: 2, kind: output, shape index: {}]  }
   0x1   :  { %8 = vsyncpa [#allocation6], 0 }
   0x2   :  { %9 = vsyncpa [#allocation4], 0  ;;  %s202_s9 = smov [#allocation2]   ;;  %s130_s13 = scalar_lea.hbm %s258_s0, 256 }
   0x3   :  { %s19_s10 = sshll.u32 %s202_s9, 4  ;;  %p131_p0 = scmp.ne.s32.totalorder %s258_s0, %s130_s13  ;;  %s20_s10 = int_to_ptr.vmem [resolvable:$true] %s19_s10 }
   0x4   :  { %p134_p1 = scmp.lt.u32.totalorder %s130_s13, %s258_s0 }
   0x6   :  { %p136_p2 = pnand %p134_p1, %p131_p0 }
   0x8   :  { %139 = shalt.err (!%p136_p2)
}
   0x9   :  { %s140_s18 = scalar_lea.vmem %s20_s10, 256  ;;  %p145_p4 = scmp.lt.s32.totalorder %s20_s10, %s20_s10 }
   0xa   :  { %p141_p3 = scmp.ne.s32.totalorder %s20_s10, %s140_s18  ;;  %p146_p5 = scmp.lt.s32.totalorder %s140_s18, %s140_s18 }
   0xc   :  { %p147_p6 = por %p146_p5, %p145_p4 }
   0xe   :  { %p148_p7 = pnand %p147_p6, %p141_p3 }
  0x10   :  { %151 = shalt.err (!%p148_p7)
}
  0x11   :  { %s203_s19 = smov 128   ;;  %s204_s20 = smov 8  }
  0x12   :  { %25 = dma.hbm_to_vmem [thread:$0]  %s258_s0, 256, %s20_s10, [#allocation3], %s203_s19, %s203_s19, %s204_s20  }
  0x13   :  { %s205_s23 = smov [#allocation5]   ;;  %s152_s27 = scalar_lea.hbm %s259_s1, 256 }
  0x14   :  { %s35_s24 = sshll.u32 %s205_s23, 4  ;;  %p153_p8 = scmp.ne.s32.totalorder %s259_s1, %s152_s27  ;;  %s36_s24 = int_to_ptr.vmem [resolvable:$true] %s35_s24 }
  0x15   :  { %p156_p9 = scmp.lt.u32.totalorder %s152_s27, %s259_s1 }
  0x17   :  { %p158_p10 = pnand %p156_p9, %p153_p8 }
  0x19   :  { %161 = shalt.err (!%p158_p10)
}
  0x1a   :  { %s162_s4 = scalar_lea.vmem %s36_s24, 256  ;;  %p167_p12 = scmp.lt.s32.totalorder %s36_s24, %s36_s24 }
  0x1b   :  { %p163_p11 = scmp.ne.s32.totalorder %s36_s24, %s162_s4  ;;  %p168_p13 = scmp.lt.s32.totalorder %s162_s4, %s162_s4 }
  0x1d   :  { %p169_p0 = por %p168_p13, %p167_p12 }
  0x1f   :  { %p170_p1 = pnand %p169_p0, %p163_p11 }
  0x21   :  { %173 = shalt.err (!%p170_p1)
}
  0x22   :  { %41 = dma.hbm_to_vmem [thread:$0]  %s259_s1, 256, %s36_s24, [#allocation6], %s203_s19, %s203_s19, %s204_s20  }
  0x23   :  { %196 = dma.done.wait [#allocation3], 256  }
  0x24   :  { %197 = vsyncadd [#allocation3], 4294967040 }
  0x25   :  { %198 = dma.done.wait [#allocation6], 256  }
  0x26   :  { %199 = vsyncadd [#allocation6], 4294967040  ;;  %v57_v0 = vld [vmem:[#allocation2] sm:$0xff]  ;;  %v58_v1 = vld [vmem:[#allocation2 + $0x8] sm:$0xff]  ;;  %s206_s1 = smov [#allocation7]  }
  0x27   :  { %v61_v2 = vand.u32 2147483647, %v57_v0  ;;  %v62_v3 = vand.u32 2147483647, %v58_v1  ;;  %v75_v12 = vsub.f32 0.0, %v57_v0  ;;  %v76_v13 = vsub.f32 0.0, %v58_v1 }
  0x28   :  { %v83_v15 = vmax.f32 %v57_v0, 0.0  ;;  %v84_v18 = vmax.f32 %v58_v1, 0.0  ;;  %v59_v28 = vld [vmem:[#allocation5] sm:$0xff]  ;;  %v60_v31 = vld [vmem:[#allocation5 + $0x8] sm:$0xff]  ;;  %s106_s6 = sshll.u32 %s206_s1, 4  ;;  %s107_s6 = int_to_ptr.vmem [resolvable:$true] %s106_s6 }
  0x29   :  { %v63_v4 = vsub.f32 0.0, %v61_v2  ;;  %v64_v5 = vsub.f32 0.0, %v62_v3  ;;  %v77_v14 = vmax.f32 %v75_v12, 0.0  ;;  %v78_v17 = vmax.f32 %v76_v13, 0.0  ;;  %s174_s7 = scalar_lea.vmem %s107_s6, 128  ;;  %p179_p3 = scmp.lt.s32.totalorder %s107_s6, %s107_s6 }
  0x2a   :  { %p175_p2 = scmp.ne.s32.totalorder %s107_s6, %s174_s7  ;;  %p180_p4 = scmp.lt.s32.totalorder %s174_s7, %s174_s7 }
  0x2b   :  { %v65_v6 = vmul.f32 1.442695, %v63_v4  ;;  %v67_v7 = vmul.f32 1.442695, %v64_v5 }
  0x2c   :  { %p181_p5 = por %p180_p4, %p179_p3 }
  0x2d   :  { %122 = vpow2.f32 %v65_v6 }
  0x2e   :  { %124 = vpow2.f32 %v67_v7  ;;  %p182_p6 = pnand %p181_p5, %p175_p2 }
  0x37   :  { %v123_v8 = vpop.eup %122 }
  0x38   :  { %v125_v9 = vpop.eup %124  ;;  %v69_v10 = vadd.f32 1.0, %v123_v8 }
  0x39   :  { %v70_v11 = vadd.f32 1.0, %v125_v9 }
  0x3a   :  { %126 = vlog2.f32 %v69_v10 }
  0x3b   :  { %128 = vlog2.f32 %v70_v11 }
  0x44   :  { %v127_v16 = vpop.eup %126 }
  0x45   :  { %v129_v19 = vpop.eup %128  ;;  %v72_v20 = vmul.f32 0.6931472, %v127_v16 }
  0x46   :  { %v74_v21 = vmul.f32 0.6931472, %v129_v19 }
  0x47   :  { %v79_v22 = vadd.f32 %v77_v14, %v72_v20  ;;  %v85_v23 = vadd.f32 %v83_v15, %v72_v20 }
  0x48   :  { %v80_v24 = vadd.f32 %v78_v17, %v74_v21  ;;  %v86_v25 = vadd.f32 %v84_v18, %v74_v21 }
  0x49   :  { %v81_v26 = vmin.f32 %v79_v22, 18.420681  ;;  %v87_v27 = vmin.f32 %v85_v23, 18.420681 }
  0x4a   :  { %v82_v29 = vmin.f32 %v80_v24, 18.420681  ;;  %v88_v30 = vmin.f32 %v86_v25, 18.420681 }
  0x4b   :  { %v89_v32 = vsub.f32 %v81_v26, %v87_v27 }
  0x4c   :  { %v90_v33 = vsub.f32 %v82_v29, %v88_v30 }
  0x4d   :  { %v91_v34 = vmul.f32 %v89_v32, %v59_v28 }
  0x4e   :  { %v92_v35 = vmul.f32 %v90_v33, %v60_v31 }
  0x4f   :  { %v93_v36 = vadd.f32 %v91_v34, %v87_v27 }
  0x50   :  { %v94_v37 = vadd.f32 %v92_v35, %v88_v30 }
  0x52   :  { %v95_v38 = vadd.f32 %v94_v37, %v93_v36 }
  0x54   :  { %99 = vst [vmem:[#allocation7] sm:$0xff] %v95_v38 }
  0x55   :  { %185 = shalt.err (!%p182_p6)
}
  0x56   :  { %s186_s10 = scalar_lea.hbm %s260_s2, 128 }
  0x57   :  { %p187_p7 = scmp.ne.s32.totalorder %s260_s2, %s186_s10  ;;  %p190_p8 = scmp.lt.u32.totalorder %s186_s10, %s260_s2 }
  0x59   :  { %p192_p9 = pnand %p190_p8, %p187_p7 }
  0x5b   :  { %195 = shalt.err (!%p192_p9)
}
  0x5c   :  { %109 = dma.vmem_to_hbm [thread:$0]  %s107_s6, 128, %s260_s2, [#allocation4]  }
  0x5d   :  { %200 = dma.done.wait [#allocation4], 128  }
  0x5e   :  { %201 = vsyncadd [#allocation4], 4294967168 }
  0x5f   :  { %113 = vsyncpa [#allocation3], 1 }
  0x60   :  { %114 = vsyncpa [#allocation6], 1 }
  0x61   :  { %115 = vsyncpa [#allocation4], 1 }

</bundles_post_ra>
